<compile_context>
chip_gen: v6e
topology: v6e:2x2x1
jax: 0.10.0
libtpu: 0.0.40
codegen_flags: <defaults>
</compile_context>

<pallas_src>
import functools

import jax
import jax.numpy as jnp
from jax.experimental import pallas as pl
from jax.experimental.pallas import tpu as pltpu

H1 = 410          # logical hidden sizes (PyTorch module)
H2 = 200
H1_PAD = 512      # lane-aligned padded hidden sizes
H2_PAD = 256
DEFAULT_BLOCK_BATCH = 1024   # multiple of 256; sized for v7x 64 MiB VMEM


def _round_up(n, m):
    return ((n + m - 1) // m) * m


def _pad_mat(w, rows, cols):
    r, c = w.shape
    return jnp.pad(w, ((0, rows - r), (0, cols - c)))


def _pad_bias_row(b, cols):
    b = b.reshape(1, -1)
    return jnp.pad(b, ((0, 0), (0, cols - b.shape[1])))


def _mlp_kernel(x_ref, w1_ref, b1_ref, w2_ref, b2_ref, w3_ref, b3_ref, *rest,
                training):
    if training:
        mask_ref, o_ref = rest
    else:
        (o_ref,) = rest

    # ---- layer_in + relu_in ----
    h1 = jnp.dot(x_ref[...], w1_ref[...], preferred_element_type=jnp.float32)
    h1 = jnp.maximum(h1 + b1_ref[...], 0.0)

    # ---- layer_hidden1 ----
    h2 = jnp.dot(h1, w2_ref[...], preferred_element_type=jnp.float32)
    h2 = h2 + b2_ref[...]

    # ---- dropout (inverted dropout; mask already holds keep/(1-p)) ----
    if training:
        h2 = h2 * mask_ref[...]

    # ---- relu_hidden1 ----
    h2 = jnp.maximum(h2, 0.0)

    # ---- layer_output ----
    out = jnp.dot(h2, w3_ref[...], preferred_element_type=jnp.float32)
    o_ref[...] = (out + b3_ref[...]).astype(o_ref.dtype)


def red_arquitectura_a(x, params, *, p_drop, training=False, rng_key=None,
                       block_batch=DEFAULT_BLOCK_BATCH):
    """Forward pass of Red_ArquitecturaA as one batch-tiled Pallas call.

    x:      (batch, input_size) float32
    params: dict with w1 (in,410), b1 (410,), w2 (410,200), b2 (200,),
            w3 (200,out), b3 (out,)   (weights already transposed to (in,out))
    """
    batch, in_features = x.shape
    out_size = params["w3"].shape[1]
    out_pad = _round_up(out_size, 128)

    # ---- zero-pad weights/biases to lane-aligned shapes (identity math) ----
    w1 = _pad_mat(params["w1"], in_features, H1_PAD)
    b1 = _pad_bias_row(params["b1"], H1_PAD)
    w2 = _pad_mat(params["w2"], H1_PAD, H2_PAD)
    b2 = _pad_bias_row(params["b2"], H2_PAD)
    w3 = _pad_mat(params["w3"], H2_PAD, out_pad)
    b3 = _pad_bias_row(params["b3"], out_pad)

    # ---- batch tiling ----
    tb = min(int(block_batch), _round_up(batch, 8))
    batch_pad = _round_up(batch, tb)
    if batch_pad != batch:
        x = jnp.pad(x, ((0, batch_pad - batch), (0, 0)))
    grid = (batch_pad // tb,)

    use_dropout = bool(training) and float(p_drop) > 0.0

    args = [x, w1, b1, w2, b2, w3, b3]
    in_specs = [
        pl.BlockSpec((tb, in_features), lambda i: (i, 0)),        # x (tiled)
        pl.BlockSpec((in_features, H1_PAD), lambda i: (0, 0)),    # weights stay
        pl.BlockSpec((1, H1_PAD), lambda i: (0, 0)),              # resident in
        pl.BlockSpec((H1_PAD, H2_PAD), lambda i: (0, 0)),         # VMEM across
        pl.BlockSpec((1, H2_PAD), lambda i: (0, 0)),              # grid steps
        pl.BlockSpec((H2_PAD, out_pad), lambda i: (0, 0)),
        pl.BlockSpec((1, out_pad), lambda i: (0, 0)),
    ]

    if use_dropout:
        if rng_key is None:
            rng_key = jax.random.PRNGKey(0)
        keep = jax.random.bernoulli(rng_key, 1.0 - float(p_drop),
                                    (batch_pad, H2_PAD))
        mask = keep.astype(jnp.float32) * (1.0 / (1.0 - float(p_drop)))
        args.append(mask)
        in_specs.append(pl.BlockSpec((tb, H2_PAD), lambda i: (i, 0)))

    kernel = functools.partial(_mlp_kernel, training=use_dropout)

    out = pl.pallas_call(
        kernel,
        out_shape=jax.ShapeDtypeStruct((batch_pad, out_pad), x.dtype),
        grid=grid,
        in_specs=in_specs,
        out_specs=pl.BlockSpec((tb, out_pad), lambda i: (i, 0)),
        compiler_params=pltpu.CompilerParams(
            dimension_semantics=("parallel",)),
    )(*args)

    return out[:batch, :out_size]


def init_params(key, input_size, output_size):
    """Deterministic PyTorch-style (uniform +-1/sqrt(fan_in)) init."""
    ks = jax.random.split(key, 6)

    def lin(kw, kb, fan_in, fan_out):
        bound = 1.0 / (fan_in ** 0.5)
        w = jax.random.uniform(kw, (fan_in, fan_out), jnp.float32, -bound, bound)
        b = jax.random.uniform(kb, (fan_out,), jnp.float32, -bound, bound)
        return w, b

    w1, b1 = lin(ks[0], ks[1], input_size, H1)
    w2, b2 = lin(ks[2], ks[3], H1, H2)
    w3, b3 = lin(ks[4], ks[5], H2, output_size)
    return {"w1": w1, "b1": b1, "w2": w2, "b2": b2, "w3": w3, "b3": b3}


def reference_forward(x, params):
    """Pure-JAX reference (eval mode: dropout = identity)."""
    h1 = jnp.maximum(x @ params["w1"] + params["b1"], 0.0)
    h2 = jnp.maximum(h1 @ params["w2"] + params["b2"], 0.0)
    return h2 @ params["w3"] + params["b3"]


if __name__ == "__main__":
    input_size = 32
    output_size = 8
    batch = 8
    p_drop = 0.2

    key = jax.random.PRNGKey(0)
    k_params, k_x, k_drop = jax.random.split(key, 3)
    params = init_params(k_params, input_size, output_size)
    x = jax.random.normal(k_x, (batch, input_size), dtype=jnp.float32)

    # Eval-mode forward (dropout is identity), verified against pure-JAX reference.
    out_eval = red_arquitectura_a(x, params, p_drop=p_drop, training=False)
    out_eval = jax.block_until_ready(out_eval)
    ref = jax.block_until_ready(reference_forward(x, params))
    assert out_eval.shape == (batch, output_size)
    assert jnp.allclose(out_eval, ref, atol=1e-4, rtol=1e-4), "mismatch vs reference"

    # Training-mode forward (inverted dropout via host-generated mask, applied
    # inside the kernel tile-by-tile).
    out_train = red_arquitectura_a(x, params, p_drop=p_drop, training=True,
                                   rng_key=k_drop)
    out_train = jax.block_until_ready(out_train)
    assert out_train.shape == (batch, output_size)

    print("KERNEL_OK")
</pallas_src>

<mosaic_0001>
module attributes {stable_mosaic.version = 11 : i64} {
  func.func @_mlp_kernel(%arg0: i32, %arg1: memref<8x32xf32, #tpu.memory_space<vmem>>, %arg2: memref<32x512xf32, #tpu.memory_space<vmem>>, %arg3: memref<1x512xf32, #tpu.memory_space<vmem>>, %arg4: memref<512x256xf32, #tpu.memory_space<vmem>>, %arg5: memref<1x256xf32, #tpu.memory_space<vmem>>, %arg6: memref<256x128xf32, #tpu.memory_space<vmem>>, %arg7: memref<1x128xf32, #tpu.memory_space<vmem>>, %arg8: memref<8x128xf32, #tpu.memory_space<vmem>>) attributes {dimension_semantics = [#tpu.dimension_semantics<parallel>], iteration_bounds = array<i64: 1>, scalar_prefetch = 0 : i64, scratch_operands = 0 : i64, tpu.core_type = #tpu.core_type<tc>, window_params = [{transform_indices = @transform_0, window_bounds = array<i64: 8, 32>}, {pipeline_mode = #tpu.pipeline_mode<synchronous>, transform_indices = @transform_1, window_bounds = array<i64: 32, 512>}, {pipeline_mode = #tpu.pipeline_mode<synchronous>, transform_indices = @transform_2, window_bounds = array<i64: 1, 512>}, {pipeline_mode = #tpu.pipeline_mode<synchronous>, transform_indices = @transform_3, window_bounds = array<i64: 512, 256>}, {pipeline_mode = #tpu.pipeline_mode<synchronous>, transform_indices = @transform_4, window_bounds = array<i64: 1, 256>}, {pipeline_mode = #tpu.pipeline_mode<synchronous>, transform_indices = @transform_5, window_bounds = array<i64: 256, 128>}, {pipeline_mode = #tpu.pipeline_mode<synchronous>, transform_indices = @transform_6, window_bounds = array<i64: 1, 128>}, {transform_indices = @transform_7, window_bounds = array<i64: 8, 128>}]} {
    %c0 = arith.constant 0 : index
    %c0_0 = arith.constant 0 : index
    %0 = vector.load %arg1[%c0, %c0_0] : memref<8x32xf32, #tpu.memory_space<vmem>>, vector<8x32xf32>
    %c0_1 = arith.constant 0 : index
    %c0_2 = arith.constant 0 : index
    %1 = vector.load %arg2[%c0_1, %c0_2] : memref<32x512xf32, #tpu.memory_space<vmem>>, vector<32x512xf32>
    %cst = arith.constant dense<0.000000e+00> : vector<8x512xf32>
    %2 = tpu.matmul %0, %1, %cst {dimension_numbers = #tpu.dot_dimension_numbers<[1], [0], [0], [1], [0, 0, 1, 1], [], []>} : vector<8x32xf32>, vector<32x512xf32>, vector<8x512xf32> -> vector<8x512xf32>
    %c0_3 = arith.constant 0 : index
    %c0_4 = arith.constant 0 : index
    %3 = vector.load %arg3[%c0_3, %c0_4] : memref<1x512xf32, #tpu.memory_space<vmem>>, vector<1x512xf32>
    %4 = vector.broadcast %3 : vector<1x512xf32> to vector<8x512xf32>
    %5 = arith.addf %2, %4 : vector<8x512xf32>
    %cst_5 = arith.constant 0.000000e+00 : f32
    %6 = vector.broadcast %cst_5 : f32 to vector<8x512xf32>
    %7 = arith.maximumf %5, %6 : vector<8x512xf32>
    %c0_6 = arith.constant 0 : index
    %c0_7 = arith.constant 0 : index
    %8 = vector.load %arg4[%c0_6, %c0_7] : memref<512x256xf32, #tpu.memory_space<vmem>>, vector<512x256xf32>
    %cst_8 = arith.constant dense<0.000000e+00> : vector<8x256xf32>
    %9 = tpu.matmul %7, %8, %cst_8 {dimension_numbers = #tpu.dot_dimension_numbers<[1], [0], [0], [1], [0, 0, 1, 1], [], []>} : vector<8x512xf32>, vector<512x256xf32>, vector<8x256xf32> -> vector<8x256xf32>
    %c0_9 = arith.constant 0 : index
    %c0_10 = arith.constant 0 : index
    %10 = vector.load %arg5[%c0_9, %c0_10] : memref<1x256xf32, #tpu.memory_space<vmem>>, vector<1x256xf32>
    %11 = vector.broadcast %10 : vector<1x256xf32> to vector<8x256xf32>
    %12 = arith.addf %9, %11 : vector<8x256xf32>
    %cst_11 = arith.constant 0.000000e+00 : f32
    %13 = vector.broadcast %cst_11 : f32 to vector<8x256xf32>
    %14 = arith.maximumf %12, %13 : vector<8x256xf32>
    %c0_12 = arith.constant 0 : index
    %c0_13 = arith.constant 0 : index
    %15 = vector.load %arg6[%c0_12, %c0_13] : memref<256x128xf32, #tpu.memory_space<vmem>>, vector<256x128xf32>
    %cst_14 = arith.constant dense<0.000000e+00> : vector<8x128xf32>
    %16 = tpu.matmul %14, %15, %cst_14 {dimension_numbers = #tpu.dot_dimension_numbers<[1], [0], [0], [1], [0, 0, 1, 1], [], []>} : vector<8x256xf32>, vector<256x128xf32>, vector<8x128xf32> -> vector<8x128xf32>
    %c0_15 = arith.constant 0 : index
    %c0_16 = arith.constant 0 : index
    %17 = vector.load %arg7[%c0_15, %c0_16] : memref<1x128xf32, #tpu.memory_space<vmem>>, vector<1x128xf32>
    %18 = vector.broadcast %17 : vector<1x128xf32> to vector<8x128xf32>
    %19 = arith.addf %16, %18 : vector<8x128xf32>
    %c0_17 = arith.constant 0 : index
    %c0_18 = arith.constant 0 : index
    %20 = vector.load %arg8[%c0_17, %c0_18] : memref<8x128xf32, #tpu.memory_space<vmem>>, vector<8x128xf32>
    tpu.vector_store %arg8[%c0_17, %c0_18], %19 {strides = array<i32>} : memref<8x128xf32, #tpu.memory_space<vmem>>, vector<8x128xf32>,
    return
  }
  func.func @transform_0(%arg0: i32) -> (i32, i32) {
    %c0_i32 = arith.constant 0 : i32
    %c0_i32_0 = arith.constant 0 : i32
    return %arg0, %c0_i32 : i32, i32
  }
  func.func @transform_1(%arg0: i32) -> (i32, i32) {
    %c0_i32 = arith.constant 0 : i32
    %c0_i32_0 = arith.constant 0 : i32
    %c0_i32_1 = arith.constant 0 : i32
    return %c0_i32, %c0_i32_0 : i32, i32
  }
  func.func @transform_2(%arg0: i32) -> (i32, i32) {
    %c0_i32 = arith.constant 0 : i32
    %c0_i32_0 = arith.constant 0 : i32
    %c0_i32_1 = arith.constant 0 : i32
    return %c0_i32, %c0_i32_0 : i32, i32
  }
  func.func @transform_3(%arg0: i32) -> (i32, i32) {
    %c0_i32 = arith.constant 0 : i32
    %c0_i32_0 = arith.constant 0 : i32
    %c0_i32_1 = arith.constant 0 : i32
    return %c0_i32, %c0_i32_0 : i32, i32
  }
  func.func @transform_4(%arg0: i32) -> (i32, i32) {
    %c0_i32 = arith.constant 0 : i32
    %c0_i32_0 = arith.constant 0 : i32
    %c0_i32_1 = arith.constant 0 : i32
    return %c0_i32, %c0_i32_0 : i32, i32
  }
  func.func @transform_5(%arg0: i32) -> (i32, i32) {
    %c0_i32 = arith.constant 0 : i32
    %c0_i32_0 = arith.constant 0 : i32
    %c0_i32_1 = arith.constant 0 : i32
    return %c0_i32, %c0_i32_0 : i32, i32
  }
  func.func @transform_6(%arg0: i32) -> (i32, i32) {
    %c0_i32 = arith.constant 0 : i32
    %c0_i32_0 = arith.constant 0 : i32
    %c0_i32_1 = arith.constant 0 : i32
    return %c0_i32, %c0_i32_0 : i32, i32
  }
  func.func @transform_7(%arg0: i32) -> (i32, i32) {
    %c0_i32 = arith.constant 0 : i32
    %c0_i32_0 = arith.constant 0 : i32
    return %arg0, %c0_i32 : i32, i32
  }
}

</mosaic_0001>

<bundles_post_ra>
// kernel: tpu_custom_call.1
= control target key start
LH: loop header
LB: loop body
LE: loop exit
PB: predicated region body
PF: predicated region fallthrough
CT: control target
= control target key end

     0   :  { %12 = vsyncpa [#allocation3], 0  ;;  %s963_s0 = inlined_call_operand.hbm [shape: f32[8,32], index: 0, kind: input, shape index: {}]   ;;  %s964_s1 = inlined_call_operand.hbm [shape: f32[32,512], index: 1, kind: input, shape index: {}]   ;;  %s965_s2 = inlined_call_operand.hbm [shape: f32[1,512], index: 2, kind: input, shape index: {}]   ;;  %s966_s3 = inlined_call_operand.hbm [shape: f32[512,256], index: 3, kind: input, shape index: {}]   ;;  %s967_s4 = inlined_call_operand.vmem [shape: f32[1,256], index: 4, kind: input, shape index: {}]   ;;  %s968_s5 = inlined_call_operand.hbm [shape: f32[256,128], index: 5, kind: input, shape index: {}]   ;;  %s969_s6 = inlined_call_operand.vmem [shape: f32[1,128], index: 6, kind: input, shape index: {}]   ;;  %s970_s7 = inlined_call_operand.hbm [shape: f32[8,128], index: 7, kind: output, shape index: {}]  }
   0x1   :  { %13 = vsyncpa [#allocation6], 0 }
   0x2   :  { %14 = vsyncpa [#allocation9], 0 }
   0x3   :  { %15 = vsyncpa [#allocation4], 0  ;;  %s870_s24 = smov [#allocation5]  }
   0x4   :  { %s31_s25 = sshll.u32 %s870_s24, 4  ;;  %s32_s25 = int_to_ptr.vmem [resolvable:$true] %s31_s25 }
   0x5   :  { %s750_s26 = scalar_lea.vmem %s32_s25, 2048  ;;  %p755_p1 = scmp.lt.s32.totalorder %s32_s25, %s32_s25 }
   0x6   :  { %p751_p0 = scmp.ne.s32.totalorder %s32_s25, %s750_s26  ;;  %p756_p2 = scmp.lt.s32.totalorder %s750_s26, %s750_s26 }
   0x8   :  { %p757_p3 = por %p756_p2, %p755_p1 }
   0xa   :  { %p758_p4 = pnand %p757_p3, %p751_p0 }
   0xc   :  { %761 = shalt.err (!%p758_p4)
}
   0xd   :  { %s871_s27 = smov 512   ;;  %s872_s28 = smov 32  }
   0xe   :  { %37 = dma.hbm_to_vmem [thread:$0]  %s964_s1, 2048, %s32_s25, [#allocation6], %s871_s27, %s871_s27, %s872_s28  }
   0xf   :  { %s873_s8 = smov [#allocation8]  }
  0x10   :  { %s53_s9 = sshll.u32 %s873_s8, 4  ;;  %s54_s9 = int_to_ptr.vmem [resolvable:$true] %s53_s9 }
  0x11   :  { %s770_s10 = scalar_lea.vmem %s54_s9, 16384  ;;  %p775_p6 = scmp.lt.s32.totalorder %s54_s9, %s54_s9 }
  0x12   :  { %p771_p5 = scmp.ne.s32.totalorder %s54_s9, %s770_s10  ;;  %p776_p7 = scmp.lt.s32.totalorder %s770_s10, %s770_s10 }
  0x14   :  { %p777_p8 = por %p776_p7, %p775_p6 }
  0x16   :  { %p778_p9 = pnand %p777_p8, %p771_p5 }
  0x18   :  { %781 = shalt.err (!%p778_p9)
}
  0x19   :  { %s874_s11 = smov 256   ;;  %s875_s12 = smov 16  }
  0x1a   :  { %59 = dma.hbm_to_vmem [thread:$0]  %s966_s3, 16384, %s54_s9, [#allocation9], %s874_s11, %s874_s11, %s875_s12  }
  0x1b   :  { %s876_s15 = smov [#allocation2]   ;;  %s877_s17 = smov [#allocation7]  }
  0x1c   :  { %s22_s16 = sshll.u32 %s876_s15, 4  ;;  %s44_s1 = sshll.u32 %s877_s17, 4  ;;  %s23_s16 = int_to_ptr.vmem [resolvable:$true] %s22_s16  ;;  %s45_s1 = int_to_ptr.vmem [resolvable:$true] %s44_s1 }
  0x1d   :  { %s790_s18 = scalar_lea.vmem %s23_s16, 128  ;;  %p795_p11 = scmp.lt.s32.totalorder %s23_s16, %s23_s16 }
  0x1e   :  { %p791_p10 = scmp.ne.s32.totalorder %s23_s16, %s790_s18  ;;  %p796_p12 = scmp.lt.s32.totalorder %s790_s18, %s790_s18 }
  0x20   :  { %p797_p13 = por %p796_p12, %p795_p11 }
  0x22   :  { %p798_p0 = pnand %p797_p13, %p791_p10 }
  0x24   :  { %801 = shalt.err (!%p798_p0)
}
  0x25   :  { %25 = dma.hbm_to_vmem [thread:$0]  %s963_s0, 128, %s23_s16, [#allocation3]  }
  0x26   :  { %s810_s21 = scalar_lea.vmem %s45_s1, 64  ;;  %p815_p2 = scmp.lt.s32.totalorder %s45_s1, %s45_s1 }
  0x27   :  { %p811_p1 = scmp.ne.s32.totalorder %s45_s1, %s810_s21  ;;  %p816_p3 = scmp.lt.s32.totalorder %s810_s21, %s810_s21 }
  0x29   :  { %p817_p4 = por %p816_p3, %p815_p2 }
  0x2b   :  { %p818_p5 = pnand %p817_p4, %p811_p1 }
  0x2d   :  { %821 = shalt.err (!%p818_p5)
}
  0x2e   :  { %47 = dma.hbm_to_vmem [thread:$0]  %s965_s2, 64, %s45_s1, [#allocation6]  }
  0x2f   :  { %s878_s23 = smov [#allocation10]  }
  0x30   :  { %s67_s24 = sshll.u32 %s878_s23, 4  ;;  %s68_s24 = int_to_ptr.vmem [resolvable:$true] %s67_s24 }
  0x31   :  { %s830_s25 = scalar_lea.vmem %s68_s24, 4096  ;;  %p835_p7 = scmp.lt.s32.totalorder %s68_s24, %s68_s24 }
  0x32   :  { %p831_p6 = scmp.ne.s32.totalorder %s68_s24, %s830_s25  ;;  %p836_p8 = scmp.lt.s32.totalorder %s830_s25, %s830_s25 }
  0x34   :  { %p837_p9 = por %p836_p8, %p835_p7 }
  0x36   :  { %p838_p10 = pnand %p837_p9, %p831_p6 }
  0x38   :  { %841 = shalt.err (!%p838_p10)
}
  0x39   :  { %s879_s0 = smov 128   ;;  %s880_s26 = smov 8  }
  0x3a   :  { %73 = dma.hbm_to_vmem [thread:$0]  %s968_s5, 4096, %s68_s24, [#allocation9], %s879_s0, %s879_s0, %s880_s26  }
  0x3b   :  { %862 = dma.done.wait [#allocation3], 128  }
  0x3c   :  { %863 = vsyncadd [#allocation3], 4294967168 }
  0x3d   :  { %864 = dma.done.wait [#allocation6], 2112  }
  0x3e   :  { %865 = vsyncadd [#allocation6], 4294965184 }
  0x3f   :  { %866 = dma.done.wait [#allocation9], 20480  }
  0x40   :  { %867 = vsyncadd [#allocation9], 4294946816  ;;  %v881_v0 = vmov 0.0   ;;  %v105_v1 = vld [vmem:[#allocation5 + $0x68] sm:$0xff]  ;;  %v104_v2 = vld [vmem:[#allocation5 + $0x60] sm:$0xff]  ;;  %vm130_vm0 = vcmask 261120  }
  0x41   :  { %198 = vmatprep.mubr.f32.mxu1 %v881_v0  ;;  %v101_v3 = vld [vmem:[#allocation5 + $0x48] sm:$0xff]  ;;  %158 = vmatprep.subr.mxu1 %v105_v1  ;;  %v100_v4 = vld [vmem:[#allocation5 + $0x40] sm:$0xff]  ;;  %v91_v9 = vld [vmem:[#allocation2] sm:$0xff]  ;;  %s882_s30 = smov [#allocation11]  }
  0x42   :  { %159 = vmatpush1.msra.mxu1 %v104_v2  ;;  %v97_v5 = vld [vmem:[#allocation5 + $0x28] sm:$0xff]  ;;  %v96_v6 = vld [vmem:[#allocation5 + $0x20] sm:$0xff]  ;;  %v107_v11 = vld [vmem:[#allocation5 + $0x78] sm:$0xff]  ;;  %s680_s8 = sshll.u32 %s882_s30, 4  ;;  %s681_s8 = int_to_ptr.vmem [resolvable:$true] %s680_s8 }
  0x43   :  { %160 = vmatprep.subr.mxu1 %v101_v3  ;;  %v93_v7 = vld [vmem:[#allocation5 + $0x8] sm:$0xff]  ;;  %v92_v8 = vld [vmem:[#allocation5] sm:$0xff]  ;;  %v310_v12 = vld [vmem:[#allocation8 + $0xf0] sm:$0xff]  ;;  %s842_s9 = scalar_lea.vmem %s681_s8, 128  ;;  %p847_p12 = scmp.lt.s32.totalorder %s681_s8, %s681_s8 }
  0x44   :  { %161 = vmatpush1.msra.mxu1 %v100_v4  ;;  %v311_v10 = vld [vmem:[#allocation8 + $0xf8] sm:$0xff]  ;;  %v309_v13 = vld [vmem:[#allocation8 + $0xe8] sm:$0xff]  ;;  %v308_v16 = vld [vmem:[#allocation8 + $0xe0] sm:$0xff]  ;;  %p843_p11 = scmp.ne.s32.totalorder %s681_s8, %s842_s9  ;;  %p848_p13 = scmp.lt.s32.totalorder %s842_s9, %s842_s9 }
  0x45   :  { %162 = vmatprep.subr.mxu1 %v97_v5  ;;  %420 = vmatprep.subr.mxu0 %v311_v10  ;;  %v106_v14 = vld [vmem:[#allocation5 + $0x70] sm:$0xff]  ;;  %v103_v15 = vld [vmem:[#allocation5 + $0x58] sm:$0xff]  ;;  %v304_v24 = vld [vmem:[#allocation8 + $0xc0] sm:$0xff] }
  0x46   :  { %163 = vmatpush1.msra.mxu1 %v96_v6  ;;  %421 = vmatpush1.msra.mxu0 %v310_v12  ;;  %v102_v17 = vld [vmem:[#allocation5 + $0x50] sm:$0xff]  ;;  %v307_v18 = vld [vmem:[#allocation8 + $0xd8] sm:$0xff]  ;;  %v300_v32 = vld [vmem:[#allocation8 + $0xa0] sm:$0xff]  ;;  %p849_p0 = por %p848_p13, %p847_p12 }
  0x47   :  { %164 = vmatprep.subr.mxu1 %v93_v7  ;;  %422 = vmatprep.subr.mxu0 %v309_v13  ;;  %v99_v19 = vld [vmem:[#allocation5 + $0x38] sm:$0xff]  ;;  %v98_v21 = vld [vmem:[#allocation5 + $0x30] sm:$0xff]  ;;  %v372_v33 = vld [vmem:[#allocation8 + $0x2e0] sm:$0xff] }
  0x48   :  { %165 = vmatpush1.msra.mxu1 %v92_v8  ;;  %v306_v20 = vld [vmem:[#allocation8 + $0xd0] sm:$0xff]  ;;  %423 = vmatpush1.msra.mxu0 %v308_v16  ;;  %v305_v22 = vld [vmem:[#allocation8 + $0xc8] sm:$0xff]  ;;  %v303_v26 = vld [vmem:[#allocation8 + $0xb8] sm:$0xff]  ;;  %p850_p1 = pnand %p849_p0, %p843_p11 }
  0x49   :  { %691 = vmatmul.mubr.msk.f32.vlgmr.msra.gmra.mxu1 %vm130_vm0, %v91_v9  ;;  %229 = vmatprep.subr.mxu1 %v107_v11  ;;  %v95_v23 = vld [vmem:[#allocation5 + $0x18] sm:$0xff]  ;;  %v94_v25 = vld [vmem:[#allocation5 + $0x10] sm:$0xff]  ;;  %v296_v40 = vld [vmem:[#allocation8 + $0x80] sm:$0xff] }
  0x4a   :  { %230 = vmatpush1.msra.mxu1 %v106_v14  ;;  %269 = vmatprep.mubr.f32.mxu1 %v881_v0  ;;  %v375_v27 = vld [vmem:[#allocation8 + $0x2f8] sm:$0xff]  ;;  %v302_v28 = vld [vmem:[#allocation8 + $0xb0] sm:$0xff]  ;;  %v301_v30 = vld [vmem:[#allocation8 + $0xa8] sm:$0xff] }
  0x4b   :  { %231 = vmatprep.subr.mxu1 %v103_v15  ;;  %424 = vmatprep.subr.mxu0 %v307_v18  ;;  %v374_v29 = vld [vmem:[#allocation8 + $0x2f0] sm:$0xff]  ;;  %v373_v31 = vld [vmem:[#allocation8 + $0x2e8] sm:$0xff]  ;;  %v299_v34 = vld [vmem:[#allocation8 + $0x98] sm:$0xff] }
  0x4c   :  { %232 = vmatpush1.msra.mxu1 %v102_v17  ;;  %425 = vmatpush1.msra.mxu0 %v306_v20  ;;  %v371_v35 = vld [vmem:[#allocation8 + $0x2d8] sm:$0xff]  ;;  %v298_v36 = vld [vmem:[#allocation8 + $0x90] sm:$0xff]  ;;  %v297_v38 = vld [vmem:[#allocation8 + $0x88] sm:$0xff] }
  0x4d   :  { %233 = vmatprep.subr.mxu1 %v99_v19  ;;  %426 = vmatprep.subr.mxu0 %v305_v22  ;;  %v370_v37 = vld [vmem:[#allocation8 + $0x2d0] sm:$0xff]  ;;  %v369_v39 = vld [vmem:[#allocation8 + $0x2c8] sm:$0xff]  ;;  %v368_v41 = vld [vmem:[#allocation8 + $0x2c0] sm:$0xff] }
  0x4e   :  { %234 = vmatpush1.msra.mxu1 %v98_v21  ;;  %427 = vmatpush1.msra.mxu0 %v304_v24  ;;  %v295_v42 = vld [vmem:[#allocation8 + $0x78] sm:$0xff]  ;;  %v294_v44 = vld [vmem:[#allocation8 + $0x70] sm:$0xff]  ;;  %v293_v46 = vld [vmem:[#allocation8 + $0x68] sm:$0xff] }
  0x4f   :  { %235 = vmatprep.subr.mxu1 %v95_v23  ;;  %428 = vmatprep.subr.mxu0 %v303_v26  ;;  %v367_v43 = vld [vmem:[#allocation8 + $0x2b8] sm:$0xff]  ;;  %v366_v45 = vld [vmem:[#allocation8 + $0x2b0] sm:$0xff]  ;;  %v365_v47 = vld [vmem:[#allocation8 + $0x2a8] sm:$0xff] }
  0x50   :  { %236 = vmatpush1.msra.mxu1 %v94_v25  ;;  %429 = vmatpush1.msra.mxu0 %v302_v28  ;;  %v292_v48 = vld [vmem:[#allocation8 + $0x60] sm:$0xff]  ;;  %v291_v50 = vld [vmem:[#allocation8 + $0x58] sm:$0xff]  ;;  %v290_v52 = vld [vmem:[#allocation8 + $0x50] sm:$0xff] }
  0x51   :  { %692 = vmatmul.mubr.msk.f32.vlgmr.msra.gmra.mxu1 %vm130_vm0, %v91_v9  ;;  %491 = vmatprep.subr.mxu1 %v375_v27  ;;  %v364_v49 = vld [vmem:[#allocation8 + $0x2a0] sm:$0xff]  ;;  %v363_v51 = vld [vmem:[#allocation8 + $0x298] sm:$0xff]  ;;  %v362_v53 = vld [vmem:[#allocation8 + $0x290] sm:$0xff] }
  0x52   :  { %492 = vmatpush1.msra.mxu1 %v374_v29  ;;  %430 = vmatprep.subr.mxu0 %v301_v30  ;;  %v289_v54 = vld [vmem:[#allocation8 + $0x48] sm:$0xff]  ;;  %v288_v56 = vld [vmem:[#allocation8 + $0x40] sm:$0xff]  ;;  %v287_v58 = vld [vmem:[#allocation8 + $0x38] sm:$0xff] }
  0x53   :  { %493 = vmatprep.subr.mxu1 %v373_v31  ;;  %431 = vmatpush1.msra.mxu0 %v300_v32  ;;  %v361_v55 = vld [vmem:[#allocation8 + $0x288] sm:$0xff]  ;;  %v360_v57 = vld [vmem:[#allocation8 + $0x280] sm:$0xff]  ;;  %v359_v59 = vld [vmem:[#allocation8 + $0x278] sm:$0xff] }
  0x54   :  { %494 = vmatpush1.msra.mxu1 %v372_v33  ;;  %432 = vmatprep.subr.mxu0 %v299_v34  ;;  %v286_v60 = vld [vmem:[#allocation8 + $0x30] sm:$0xff]  ;;  %v285_v62 = vld [vmem:[#allocation8 + $0x28] sm:$0xff]  ;;  %v284_v0 = vld [vmem:[#allocation8 + $0x20] sm:$0xff] }
  0x55   :  { %495 = vmatprep.subr.mxu1 %v371_v35  ;;  %433 = vmatpush1.msra.mxu0 %v298_v36  ;;  %v358_v61 = vld [vmem:[#allocation8 + $0x270] sm:$0xff]  ;;  %v357_v63 = vld [vmem:[#allocation8 + $0x268] sm:$0xff]  ;;  %v356_v1 = vld [vmem:[#allocation8 + $0x260] sm:$0xff] }
  0x56   :  { %496 = vmatpush1.msra.mxu1 %v370_v37  ;;  %434 = vmatprep.subr.mxu0 %v297_v38  ;;  %v283_v2 = vld [vmem:[#allocation8 + $0x18] sm:$0xff]  ;;  %v282_v4 = vld [vmem:[#allocation8 + $0x10] sm:$0xff]  ;;  %v281_v6 = vld [vmem:[#allocation8 + $0x8] sm:$0xff] }
  0x57   :  { %497 = vmatprep.subr.mxu1 %v369_v39  ;;  %435 = vmatpush1.msra.mxu0 %v296_v40  ;;  %v355_v3 = vld [vmem:[#allocation8 + $0x258] sm:$0xff]  ;;  %v354_v5 = vld [vmem:[#allocation8 + $0x250] sm:$0xff]  ;;  %v353_v7 = vld [vmem:[#allocation8 + $0x248] sm:$0xff] }
  0x58   :  { %498 = vmatpush1.msra.mxu1 %v368_v41  ;;  %436 = vmatprep.subr.mxu0 %v295_v42  ;;  %v280_v8 = vld [vmem:[#allocation8] sm:$0xff]  ;;  %v343_v10 = vld [vmem:[#allocation8 + $0x1f8] sm:$0xff]  ;;  %v342_v12 = vld [vmem:[#allocation8 + $0x1f0] sm:$0xff] }
  0x59   :  { %499 = vmatprep.subr.mxu1 %v367_v43  ;;  %437 = vmatpush1.msra.mxu0 %v294_v44  ;;  %v352_v9 = vld [vmem:[#allocation8 + $0x240] sm:$0xff]  ;;  %v351_v11 = vld [vmem:[#allocation8 + $0x238] sm:$0xff]  ;;  %v350_v13 = vld [vmem:[#allocation8 + $0x230] sm:$0xff] }
  0x5a   :  { %500 = vmatpush1.msra.mxu1 %v366_v45  ;;  %438 = vmatprep.subr.mxu0 %v293_v46  ;;  %v341_v14 = vld [vmem:[#allocation8 + $0x1e8] sm:$0xff]  ;;  %v340_v16 = vld [vmem:[#allocation8 + $0x1e0] sm:$0xff]  ;;  %v339_v18 = vld [vmem:[#allocation8 + $0x1d8] sm:$0xff] }
  0x5b   :  { %501 = vmatprep.subr.mxu1 %v365_v47  ;;  %439 = vmatpush1.msra.mxu0 %v292_v48  ;;  %v349_v15 = vld [vmem:[#allocation8 + $0x228] sm:$0xff]  ;;  %v348_v17 = vld [vmem:[#allocation8 + $0x220] sm:$0xff]  ;;  %v347_v19 = vld [vmem:[#allocation8 + $0x218] sm:$0xff] }
  0x5c   :  { %502 = vmatpush1.msra.mxu1 %v364_v49  ;;  %440 = vmatprep.subr.mxu0 %v291_v50  ;;  %v338_v20 = vld [vmem:[#allocation8 + $0x1d0] sm:$0xff]  ;;  %v337_v22 = vld [vmem:[#allocation8 + $0x1c8] sm:$0xff]  ;;  %v336_v24 = vld [vmem:[#allocation8 + $0x1c0] sm:$0xff] }
  0x5d   :  { %503 = vmatprep.subr.mxu1 %v363_v51  ;;  %441 = vmatpush1.msra.mxu0 %v290_v52  ;;  %v346_v21 = vld [vmem:[#allocation8 + $0x210] sm:$0xff]  ;;  %v345_v23 = vld [vmem:[#allocation8 + $0x208] sm:$0xff]  ;;  %v344_v25 = vld [vmem:[#allocation8 + $0x200] sm:$0xff] }
  0x5e   :  { %504 = vmatpush1.msra.mxu1 %v362_v53  ;;  %442 = vmatprep.subr.mxu0 %v289_v54  ;;  %v335_v26 = vld [vmem:[#allocation8 + $0x1b8] sm:$0xff]  ;;  %v334_v28 = vld [vmem:[#allocation8 + $0x1b0] sm:$0xff]  ;;  %v333_v30 = vld [vmem:[#allocation8 + $0x1a8] sm:$0xff] }
  0x5f   :  { %505 = vmatprep.subr.mxu1 %v361_v55  ;;  %443 = vmatpush1.msra.mxu0 %v288_v56  ;;  %v407_v27 = vld [vmem:[#allocation8 + $0x3f8] sm:$0xff]  ;;  %v406_v29 = vld [vmem:[#allocation8 + $0x3f0] sm:$0xff]  ;;  %v405_v31 = vld [vmem:[#allocation8 + $0x3e8] sm:$0xff] }
  0x60   :  { %506 = vmatpush1.msra.mxu1 %v360_v57  ;;  %444 = vmatprep.subr.mxu0 %v287_v58  ;;  %v332_v32 = vld [vmem:[#allocation8 + $0x1a0] sm:$0xff]  ;;  %v331_v34 = vld [vmem:[#allocation8 + $0x198] sm:$0xff]  ;;  %v330_v36 = vld [vmem:[#allocation8 + $0x190] sm:$0xff] }
  0x61   :  { %507 = vmatprep.subr.mxu1 %v359_v59  ;;  %445 = vmatpush1.msra.mxu0 %v286_v60  ;;  %v404_v33 = vld [vmem:[#allocation8 + $0x3e0] sm:$0xff]  ;;  %v403_v35 = vld [vmem:[#allocation8 + $0x3d8] sm:$0xff]  ;;  %v402_v37 = vld [vmem:[#allocation8 + $0x3d0] sm:$0xff] }
  0x62   :  { %508 = vmatpush1.msra.mxu1 %v358_v61  ;;  %446 = vmatprep.subr.mxu0 %v285_v62  ;;  %v329_v38 = vld [vmem:[#allocation8 + $0x188] sm:$0xff]  ;;  %v328_v40 = vld [vmem:[#allocation8 + $0x180] sm:$0xff]  ;;  %v327_v42 = vld [vmem:[#allocation8 + $0x178] sm:$0xff] }
  0x63   :  { %509 = vmatprep.subr.mxu1 %v357_v63  ;;  %447 = vmatpush1.msra.mxu0 %v284_v0  ;;  %v401_v39 = vld [vmem:[#allocation8 + $0x3c8] sm:$0xff]  ;;  %v400_v41 = vld [vmem:[#allocation8 + $0x3c0] sm:$0xff]  ;;  %v399_v43 = vld [vmem:[#allocation8 + $0x3b8] sm:$0xff] }
  0x64   :  { %510 = vmatpush1.msra.mxu1 %v356_v1  ;;  %448 = vmatprep.subr.mxu0 %v283_v2  ;;  %v326_v44 = vld [vmem:[#allocation8 + $0x170] sm:$0xff]  ;;  %v325_v46 = vld [vmem:[#allocation8 + $0x168] sm:$0xff]  ;;  %v324_v48 = vld [vmem:[#allocation8 + $0x160] sm:$0xff] }
  0x65   :  { %511 = vmatprep.subr.mxu1 %v355_v3  ;;  %449 = vmatpush1.msra.mxu0 %v282_v4  ;;  %v398_v45 = vld [vmem:[#allocation8 + $0x3b0] sm:$0xff]  ;;  %v397_v47 = vld [vmem:[#allocation8 + $0x3a8] sm:$0xff]  ;;  %v396_v49 = vld [vmem:[#allocation8 + $0x3a0] sm:$0xff] }
  0x66   :  { %512 = vmatpush1.msra.mxu1 %v354_v5  ;;  %450 = vmatprep.subr.mxu0 %v281_v6  ;;  %v323_v50 = vld [vmem:[#allocation8 + $0x158] sm:$0xff]  ;;  %v322_v52 = vld [vmem:[#allocation8 + $0x150] sm:$0xff]  ;;  %v321_v54 = vld [vmem:[#allocation8 + $0x148] sm:$0xff] }
  0x67   :  { %513 = vmatprep.subr.mxu1 %v353_v7  ;;  %451 = vmatpush1.msra.mxu0 %v280_v8  ;;  %v395_v51 = vld [vmem:[#allocation8 + $0x398] sm:$0xff]  ;;  %v394_v53 = vld [vmem:[#allocation8 + $0x390] sm:$0xff]  ;;  %v393_v55 = vld [vmem:[#allocation8 + $0x388] sm:$0xff] }
  0x68   :  { %514 = vmatpush1.msra.mxu1 %v352_v9  ;;  %452 = vmatprep.subr.mxu0 %v343_v10  ;;  %v320_v56 = vld [vmem:[#allocation8 + $0x140] sm:$0xff]  ;;  %v319_v58 = vld [vmem:[#allocation8 + $0x138] sm:$0xff]  ;;  %v318_v60 = vld [vmem:[#allocation8 + $0x130] sm:$0xff] }
  0x69   :  { %515 = vmatprep.subr.mxu1 %v351_v11  ;;  %453 = vmatpush2.msra.mxu0 %v342_v12  ;;  %v392_v57 = vld [vmem:[#allocation8 + $0x380] sm:$0xff]  ;;  %v391_v59 = vld [vmem:[#allocation8 + $0x378] sm:$0xff]  ;;  %v390_v61 = vld [vmem:[#allocation8 + $0x370] sm:$0xff] }
  0x6a   :  { %516 = vmatpush1.msra.mxu1 %v350_v13  ;;  %454 = vmatprep.subr.mxu0 %v341_v14  ;;  %v317_v62 = vld [vmem:[#allocation8 + $0x128] sm:$0xff]  ;;  %v316_v0 = vld [vmem:[#allocation8 + $0x120] sm:$0xff]  ;;  %v315_v2 = vld [vmem:[#allocation8 + $0x118] sm:$0xff] }
  0x6b   :  { %517 = vmatprep.subr.mxu1 %v349_v15  ;;  %455 = vmatpush2.msra.mxu0 %v340_v16  ;;  %v389_v63 = vld [vmem:[#allocation8 + $0x368] sm:$0xff]  ;;  %v388_v1 = vld [vmem:[#allocation8 + $0x360] sm:$0xff]  ;;  %v387_v3 = vld [vmem:[#allocation8 + $0x358] sm:$0xff] }
  0x6c   :  { %518 = vmatpush1.msra.mxu1 %v348_v17  ;;  %456 = vmatprep.subr.mxu0 %v339_v18  ;;  %v314_v4 = vld [vmem:[#allocation8 + $0x110] sm:$0xff]  ;;  %v313_v6 = vld [vmem:[#allocation8 + $0x108] sm:$0xff]  ;;  %v312_v8 = vld [vmem:[#allocation8 + $0x100] sm:$0xff] }
  0x6d   :  { %519 = vmatprep.subr.mxu1 %v347_v19  ;;  %457 = vmatpush2.msra.mxu0 %v338_v20  ;;  %v386_v5 = vld [vmem:[#allocation8 + $0x350] sm:$0xff]  ;;  %v385_v7 = vld [vmem:[#allocation8 + $0x348] sm:$0xff]  ;;  %v384_v9 = vld [vmem:[#allocation8 + $0x340] sm:$0xff]  ;;  %v110_v19 = vlaneseq }
  0x6e   :  { %520 = vmatpush1.msra.mxu1 %v346_v21  ;;  %458 = vmatprep.subr.mxu0 %v337_v22  ;;  %v383_v10 = vld [vmem:[#allocation8 + $0x338] sm:$0xff]  ;;  %v382_v11 = vld [vmem:[#allocation8 + $0x330] sm:$0xff]  ;;  %v381_v12 = vld [vmem:[#allocation8 + $0x328] sm:$0xff] }
  0x6f   :  { %521 = vmatprep.subr.mxu1 %v345_v23  ;;  %459 = vmatpush2.msra.mxu0 %v336_v24  ;;  %v380_v13 = vld [vmem:[#allocation8 + $0x320] sm:$0xff]  ;;  %v379_v14 = vld [vmem:[#allocation8 + $0x318] sm:$0xff]  ;;  %v378_v15 = vld [vmem:[#allocation8 + $0x310] sm:$0xff]  ;;  %v940_v20 = vshrl.u32 %v110_v19, 7 }
  0x70   :  { %522 = vmatpush1.msra.mxu1 %v344_v25  ;;  %460 = vmatprep.subr.mxu0 %v335_v26  ;;  %v377_v16 = vld [vmem:[#allocation8 + $0x308] sm:$0xff]  ;;  %v376_v17 = vld [vmem:[#allocation8 + $0x300] sm:$0xff]  ;;  %v595_v18 = vld [vmem:[#allocation10 + $0xf8] sm:$0xff] }
  0x71   :  { %523 = vmatprep.subr.mxu1 %v407_v27  ;;  %461 = vmatpush2.msra.mxu0 %v334_v28  ;;  %v112_v21 = vsub.s32 0, %v940_v20  ;;  %v108_v22 = vld [vmem:[#allocation7] sm:$0xf]  ;;  %v116_v23 = vsub.s32 1, %v940_v20 }
  0x72   :  { %524 = vmatpush2.msra.mxu1 %v406_v29  ;;  %462 = vmatprep.subr.mxu0 %v333_v30  ;;  %v120_v29 = vsub.s32 2, %v940_v20 }
  0x73   :  { %525 = vmatprep.subr.mxu1 %v405_v31  ;;  %463 = vmatpush2.msra.mxu0 %v332_v32  ;;  %v113_v24 = vrot.slane %v108_v22, %v112_v21  ;;  %v117_v25 = vrot.slane %v108_v22, %v116_v23  ;;  %v124_v31 = vsub.s32 3, %v940_v20 }
  0x74   :  { %526 = vmatpush2.msra.mxu1 %v404_v33  ;;  %464 = vmatprep.subr.mxu0 %v331_v34  ;;  %v121_v34 = vrot.slane %v108_v22, %v120_v29 }
  0x75   :  { %527 = vmatprep.subr.mxu1 %v403_v35  ;;  %465 = vmatpush2.msra.mxu0 %v330_v36  ;;  %v579_v35 = vld [vmem:[#allocation10 + $0x78] sm:$0xff]  ;;  %v125_v36 = vrot.slane %v108_v22, %v124_v31 }
  0x76   :  { %528 = vmatpush2.msra.mxu1 %v402_v37  ;;  %466 = vmatprep.subr.mxu0 %v329_v38  ;;  %v594_v37 = vld [vmem:[#allocation10 + $0xf0] sm:$0xff] }
  0x77   :  { %529 = vmatprep.subr.mxu1 %v401_v39  ;;  %467 = vmatpush2.msra.mxu0 %v328_v40  ;;  %v578_v39 = vld [vmem:[#allocation10 + $0x70] sm:$0xff]  ;;  %v593_v40 = vld [vmem:[#allocation10 + $0xe8] sm:$0xff] }
  0x78   :  { %530 = vmatpush2.msra.mxu1 %v400_v41  ;;  %468 = vmatprep.subr.mxu0 %v327_v42 }
  0x79   :  { %531 = vmatprep.subr.mxu1 %v399_v43  ;;  %469 = vmatpush2.msra.mxu0 %v326_v44  ;;  %v577_v43 = vld [vmem:[#allocation10 + $0x68] sm:$0xff] }
  0x7a   :  { %532 = vmatpush2.msra.mxu1 %v398_v45  ;;  %470 = vmatprep.subr.mxu0 %v325_v46  ;;  %v592_v45 = vld [vmem:[#allocation10 + $0xe0] sm:$0xff] }
  0x7b   :  { %533 = vmatprep.subr.mxu1 %v397_v47  ;;  %471 = vmatpush2.msra.mxu0 %v324_v48  ;;  %v576_v46 = vld [vmem:[#allocation10 + $0x60] sm:$0xff]  ;;  %v591_v48 = vld [vmem:[#allocation10 + $0xd8] sm:$0xff] }
  0x7c   :  { %534 = vmatpush2.msra.mxu1 %v396_v49  ;;  %472 = vmatprep.subr.mxu0 %v323_v50  ;;  %v575_v50 = vld [vmem:[#allocation10 + $0x58] sm:$0xff] }
  0x7d   :  { %535 = vmatprep.subr.mxu1 %v395_v51  ;;  %473 = vmatpush2.msra.mxu0 %v322_v52  ;;  %v590_v51 = vld [vmem:[#allocation10 + $0xd0] sm:$0xff] }
  0x7e   :  { %536 = vmatpush2.msra.mxu1 %v394_v53  ;;  %474 = vmatprep.subr.mxu0 %v321_v54  ;;  %v574_v52 = vld [vmem:[#allocation10 + $0x50] sm:$0xff]  ;;  %v589_v53 = vld [vmem:[#allocation10 + $0xc8] sm:$0xff] }
  0x7f   :  { %537 = vmatprep.subr.mxu1 %v393_v55  ;;  %475 = vmatpush2.msra.mxu0 %v320_v56  ;;  %v573_v54 = vld [vmem:[#allocation10 + $0x48] sm:$0xff]  ;;  %v588_v55 = vld [vmem:[#allocation10 + $0xc0] sm:$0xff] }
  0x80   :  { %538 = vmatpush2.msra.mxu1 %v392_v57  ;;  %476 = vmatprep.subr.mxu0 %v319_v58  ;;  %v572_v56 = vld [vmem:[#allocation10 + $0x40] sm:$0xff]  ;;  %v587_v57 = vld [vmem:[#allocation10 + $0xb8] sm:$0xff] }
  0x81   :  { %539 = vmatprep.subr.mxu1 %v391_v59  ;;  %477 = vmatpush2.msra.mxu0 %v318_v60  ;;  %v571_v58 = vld [vmem:[#allocation10 + $0x38] sm:$0xff]  ;;  %v586_v59 = vld [vmem:[#allocation10 + $0xb0] sm:$0xff] }
  0x82   :  { %540 = vmatpush2.msra.mxu1 %v390_v61  ;;  %478 = vmatprep.subr.mxu0 %v317_v62  ;;  %v570_v60 = vld [vmem:[#allocation10 + $0x30] sm:$0xff]  ;;  %v585_v61 = vld [vmem:[#allocation10 + $0xa8] sm:$0xff] }
  0x83   :  { %541 = vmatprep.subr.mxu1 %v389_v63  ;;  %479 = vmatpush2.msra.mxu0 %v316_v0  ;;  %v569_v62 = vld [vmem:[#allocation10 + $0x28] sm:$0xff]  ;;  %v584_v63 = vld [vmem:[#allocation10 + $0xa0] sm:$0xff] }
  0x84   :  { %542 = vmatpush2.msra.mxu1 %v388_v1  ;;  %480 = vmatprep.subr.mxu0 %v315_v2  ;;  %v568_v0 = vld [vmem:[#allocation10 + $0x20] sm:$0xff]  ;;  %v583_v1 = vld [vmem:[#allocation10 + $0x98] sm:$0xff] }
  0x85   :  { %543 = vmatprep.subr.mxu1 %v387_v3  ;;  %481 = vmatpush2.msra.mxu0 %v314_v4  ;;  %v567_v2 = vld [vmem:[#allocation10 + $0x18] sm:$0xff]  ;;  %v582_v3 = vld [vmem:[#allocation10 + $0x90] sm:$0xff] }
  0x86   :  { %544 = vmatpush2.msra.mxu1 %v386_v5  ;;  %482 = vmatprep.subr.mxu0 %v313_v6  ;;  %v566_v4 = vld [vmem:[#allocation10 + $0x10] sm:$0xff]  ;;  %v581_v5 = vld [vmem:[#allocation10 + $0x88] sm:$0xff] }
  0x87   :  { %545 = vmatprep.subr.mxu1 %v385_v7  ;;  %483 = vmatpush2.msra.mxu0 %v312_v8  ;;  %v565_v6 = vld [vmem:[#allocation10 + $0x8] sm:$0xff]  ;;  %v580_v7 = vld [vmem:[#allocation10 + $0x80] sm:$0xff] }
  0x88   :  { %546 = vmatpush2.msra.mxu1 %v384_v9  ;;  %694 = vmatprep.subr.mxu0 %v595_v18  ;;  %v564_v8 = vld [vmem:[#allocation10] sm:$0xff]  ;;  %v408_v9 = vld [vmem:[%s967_s4] sm:$0x3] }
  0x89   :  { %547 = vmatprep.subr.mxu1 %v383_v10 }
  0x8a   :  { %548 = vmatpush2.msra.mxu1 %v382_v11  ;;  %v413_v11 = vrot.slane %v408_v9, %v112_v21 }
  0x8b   :  { %549 = vmatprep.subr.mxu1 %v381_v12  ;;  %v417_v12 = vrot.slane %v408_v9, %v116_v23 }
  0x8c   :  { %550 = vmatpush2.msra.mxu1 %v380_v13 }
  0x8d   :  { %551 = vmatprep.subr.mxu1 %v379_v14 }
  0x8e   :  { %552 = vmatpush2.msra.mxu1 %v378_v15 }
  0x8f   :  { %553 = vmatprep.subr.mxu1 %v377_v16 }
  0x90   :  { %554 = vmatpush2.msra.mxu1 %v376_v17 }
 0x109   :  { %v200_v26 = vpop.f32.mrf.mxu1 }
 0x10a   :  { %v201_v27 = vadd.f32 %v200_v26, %v113_v24  ;;  %v693_v26 = vld [vmem:[%s969_s6] ss:$0 sm:$0xff] }
 0x10b   :  { %v202_v28 = vpop.f32.mrf.mxu1 }
 0x10c   :  { %v203_v30 = vadd.f32 %v202_v28, %v117_v25  ;;  %v276_v33 = vmax.f32 %v201_v27, 0.0 }
 0x10e   :  { %v277_v32 = vmax.f32 %v203_v30, 0.0 }
 0x110   :  { %484 = vmatprep.mubr.f32.mxu0 %v277_v32 }
 0x111   :  { %v271_v38 = vpop.f32.mrf.mxu1  ;;  %485 = vmatmul.mubr.f32.vlgmr.msra.gmra.mxu0 %v276_v33 }
 0x112   :  { %695 = vmatpush3.msra.mxu0 %v579_v35  ;;  %v272_v41 = vadd.f32 %v271_v38, %v121_v34 }
 0x113   :  { %v273_v42 = vpop.f32.mrf.mxu1  ;;  %696 = vmatprep.subr.mxu0 %v594_v37 }
 0x114   :  { %v274_v44 = vadd.f32 %v273_v42, %v125_v36  ;;  %697 = vmatpush3.msra.mxu0 %v578_v39  ;;  %v278_v49 = vmax.f32 %v272_v41, 0.0 }
 0x115   :  { %698 = vmatprep.subr.mxu0 %v593_v40 }
 0x116   :  { %v279_v47 = vmax.f32 %v274_v44, 0.0  ;;  %699 = vmatpush3.msra.mxu0 %v577_v43 }
 0x117   :  { %700 = vmatprep.subr.mxu0 %v592_v45 }
 0x118   :  { %555 = vmatprep.mubr.f32.mxu1 %v279_v47  ;;  %701 = vmatpush3.msra.mxu0 %v576_v46 }
 0x119   :  { %556 = vmatmul.mubr.f32.vlgmr.msra.gmra.mxu1 %v278_v49  ;;  %702 = vmatprep.subr.mxu0 %v591_v48 }
 0x11a   :  { %703 = vmatpush3.msra.mxu0 %v575_v50 }
 0x11b   :  { %704 = vmatprep.subr.mxu0 %v590_v51 }
 0x11c   :  { %705 = vmatpush3.msra.mxu0 %v574_v52 }
 0x11d   :  { %706 = vmatprep.subr.mxu0 %v589_v53 }
 0x11e   :  { %707 = vmatpush3.msra.mxu0 %v573_v54 }
 0x11f   :  { %708 = vmatprep.subr.mxu0 %v588_v55 }
 0x120   :  { %709 = vmatpush3.msra.mxu0 %v572_v56 }
 0x121   :  { %710 = vmatprep.subr.mxu0 %v587_v57 }
 0x122   :  { %711 = vmatpush3.msra.mxu0 %v571_v58 }
 0x123   :  { %712 = vmatprep.subr.mxu0 %v586_v59 }
 0x124   :  { %713 = vmatpush3.msra.mxu0 %v570_v60 }
 0x125   :  { %714 = vmatprep.subr.mxu0 %v585_v61 }
 0x126   :  { %715 = vmatpush3.msra.mxu0 %v569_v62 }
 0x127   :  { %716 = vmatprep.subr.mxu0 %v584_v63 }
 0x128   :  { %717 = vmatpush3.msra.mxu0 %v568_v0 }
 0x129   :  { %718 = vmatprep.subr.mxu0 %v583_v1 }
 0x12a   :  { %719 = vmatpush3.msra.mxu0 %v567_v2 }
 0x12b   :  { %720 = vmatprep.subr.mxu0 %v582_v3 }
 0x12c   :  { %721 = vmatpush3.msra.mxu0 %v566_v4 }
 0x12d   :  { %722 = vmatprep.subr.mxu0 %v581_v5 }
 0x12e   :  { %723 = vmatpush3.msra.mxu0 %v565_v6 }
 0x12f   :  { %724 = vmatprep.subr.mxu0 %v580_v7 }
 0x130   :  { %725 = vmatpush3.msra.mxu0 %v564_v8 }
 0x1d1   :  { %v486_v10 = vpop.f32.mrf.mxu0 }
 0x1d2   :  { %v487_v14 = vadd.f32 %v486_v10, %v413_v11 }
 0x1d3   :  { %v488_v13 = vpop.f32.mrf.mxu0 }
 0x1d4   :  { %v489_v16 = vadd.f32 %v488_v13, %v417_v12 }
 0x1d9   :  { %v557_v15 = vpop.f32.mrf.mxu1 }
 0x1da   :  { %v558_v17 = vadd.f32 %v557_v15, %v487_v14 }
 0x1db   :  { %v559_v18 = vpop.f32.mrf.mxu1 }
 0x1dc   :  { %v560_v19 = vadd.f32 %v559_v18, %v489_v16  ;;  %v562_v24 = vmax.f32 %v558_v17, 0.0 }
 0x1de   :  { %v563_v22 = vmax.f32 %v560_v19, 0.0 }
 0x1e0   :  { %667 = vmatprep.mubr.f32.mxu0 %v563_v22 }
 0x1e1   :  { %668 = vmatmul.mubr.f32.vlgmr.msra.gmra.mxu0 %v562_v24 }
 0x2a1   :  { %v726_v25 = vpop.f32.mrf.mxu0 }
 0x2a3   :  { %v727_v21 = vpop.f32.mrf.mxu0 }
 0x2a4   :  { %v728_v20 = vadd.f32 %v727_v21, %v726_v25 }
 0x2a6   :  { %v670_v23 = vadd.f32 %v728_v20, %v693_v26 }
 0x2a8   :  { %673 = vst [vmem:[#allocation11] sm:$0xff] %v670_v23 }
 0x2a9   :  { %853 = shalt.err (!%p850_p1)
}
 0x2aa   :  { %683 = dma.vmem_to_hbm [thread:$0]  %s681_s8, 128, %s970_s7, [#allocation4]  }
 0x2ab   :  { %868 = dma.done.wait [#allocation4], 128  }
 0x2ac   :  { %869 = vsyncadd [#allocation4], 4294967168 }
 0x2ad   :  { %687 = vsyncpa [#allocation3], 1 }
 0x2ae   :  { %688 = vsyncpa [#allocation6], 1 }
 0x2af   :  { %689 = vsyncpa [#allocation9], 1 }
 0x2b0   :  { %690 = vsyncpa [#allocation4], 1 }

</bundles_post_ra>
